<compile_context>
chip_gen: v6e
topology: v6e:2x2x1
jax: 0.10.0
libtpu: 0.0.40
codegen_flags: <defaults>
</compile_context>

<pallas_src>
import functools

import jax
import jax.numpy as jnp
from jax.experimental import pallas as pl
from jax.experimental.pallas import tpu as pltpu


# VMEM budgets chosen to be safe on v7x (64 MiB physical per TC) while still being a
# large raise over the default scoped limits on v5e (16 MiB) / v6e (32 MiB).
_VMEM_LIMIT_BYTES = 48 * 1024 * 1024     # scoped VMEM limit handed to the compiler
_FUSED_BUDGET = 40 * 1024 * 1024         # fused path: double-buffered slabs + f32 temps
_STREAM_BUDGET = 40 * 1024 * 1024        # streaming path: 4 tiles (in + out, 2-deep each)


# --------------------------------------------------------------------------------------
# Fused single-pass kernel: stats + conv_du gate + rescale, one image per grid step.
# --------------------------------------------------------------------------------------
def cca_fused_kernel(x_ref, w1_ref, b1_ref, w2_ref, b2_ref, o_ref, *, hw_total):
    # x_ref/o_ref: (1, C, HW)   w1_ref/w2_ref: (C, Cmid)   b1_ref: (1, Cmid)   b2_ref: (C, 1)
    x32 = x_ref[0].astype(jnp.float32)                        # (C, HW)
    inv_hw = 1.0 / hw_total
    mean = jnp.sum(x32, axis=1, keepdims=True) * inv_hw       # (C, 1)
    d = x32 - mean
    var = jnp.sum(d * d, axis=1, keepdims=True) * inv_hw      # exact (no cancellation)
    y = jnp.sqrt(var) + mean                                  # contrast + avg_pool

    # conv_du: two tiny 1x1 convs on a (C,) vector -> VPU/XLU, not MXU.
    z1 = jnp.sum(w1_ref[...] * y, axis=0, keepdims=True) + b1_ref[...]    # (1, Cmid)
    z1 = jnp.maximum(z1, 0.0)                                             # ReLU
    z2 = jnp.sum(w2_ref[...] * z1, axis=1, keepdims=True) + b2_ref[...]   # (C, 1)
    scale = 1.0 / (1.0 + jnp.exp(-z2))                                    # Sigmoid

    # Rescale in native dtype with a single lane-dense writeback.
    o_ref[0] = (x_ref[0] * scale.astype(o_ref.dtype)).astype(o_ref.dtype)


# --------------------------------------------------------------------------------------
# Streaming pass 1: per-channel sum / sumsq over spatial tiles, then the conv_du gate.
# --------------------------------------------------------------------------------------
def cca_stats_kernel(x_ref, w1_ref, b1_ref, w2_ref, b2_ref, scale_ref,
                     sum_ref, sq_ref, *, hw_total, blk):
    # x_ref: (1, C, blk)  scale_ref: (1, C, 1) (resident across j)
    # sum_ref/sq_ref: (C, 128) f32 partial accumulators (XLU reduce deferred to last tile)
    j = pl.program_id(1)

    @pl.when(j == 0)
    def _():
        sum_ref[...] = jnp.zeros_like(sum_ref)
        sq_ref[...] = jnp.zeros_like(sq_ref)

    x = x_ref[0].astype(jnp.float32)                          # (C, blk)

    # Mask the ragged last tile (only emitted when HW is not a multiple of blk).
    if (hw_total % blk) != 0:
        lane = jax.lax.broadcasted_iota(jnp.int32, x.shape, 1)
        valid = (j * blk + lane) < hw_total
        x = jnp.where(valid, x, 0.0)

    # Accumulate 128-lane partials with pure VPU vreg adds (lane-aligned static slices
    # are free views); keeps the hot loop off the XLU.
    nseg = blk // 128
    xs0 = x[:, 0:128]
    part_s = xs0
    part_q = xs0 * xs0
    for k in range(1, nseg):
        xk = x[:, k * 128:(k + 1) * 128]
        part_s = part_s + xk
        part_q = part_q + xk * xk
    sum_ref[...] += part_s
    sq_ref[...] += part_q

    @pl.when(j == pl.num_programs(1) - 1)
    def _():
        inv_hw = 1.0 / hw_total
        s = jnp.sum(sum_ref[...], axis=1, keepdims=True)      # (C, 1) single XLU reduce
        q = jnp.sum(sq_ref[...], axis=1, keepdims=True)
        mean = s * inv_hw
        # One-pass variance in f32 (clamped); fine for typical SR patch sizes.
        var = jnp.maximum(q * inv_hw - mean * mean, 0.0)
        y = jnp.sqrt(var) + mean

        z1 = jnp.sum(w1_ref[...] * y, axis=0, keepdims=True) + b1_ref[...]   # (1, Cmid)
        z1 = jnp.maximum(z1, 0.0)
        z2 = jnp.sum(w2_ref[...] * z1, axis=1, keepdims=True) + b2_ref[...]  # (C, 1)
        scale = 1.0 / (1.0 + jnp.exp(-z2))
        scale_ref[0] = scale.astype(scale_ref.dtype)          # x.dtype: apply stays native


# --------------------------------------------------------------------------------------
# Streaming pass 2: lane-dense channel-wise rescale.
# --------------------------------------------------------------------------------------
def cca_apply_kernel(x_ref, scale_ref, o_ref):
    # x_ref: (1, C, blk), scale_ref: (1, C, 1) (x.dtype), o_ref: (1, C, blk)
    o_ref[0] = (x_ref[0] * scale_ref[0]).astype(o_ref.dtype)


# --------------------------------------------------------------------------------------
# Wrapper
# --------------------------------------------------------------------------------------
def cca_layer_pallas(x_nchw, w1, b1, w2, b2, *, force_streaming=False, stream_block=None):
    """x_nchw: (N, C, H, W); w1: (Cmid, C, 1, 1); b1: (Cmid,);
       w2: (C, Cmid, 1, 1); b2: (C,)  ->  (N, C, H, W)"""
    N, C, H, W = x_nchw.shape
    Cmid = w1.shape[0]
    HW = H * W
    dtype = x_nchw.dtype
    itemsize = jnp.dtype(dtype).itemsize

    x = x_nchw.reshape(N, C, HW)                 # zero-copy: spatial on lanes

    w1t = jnp.transpose(w1[:, :, 0, 0], (1, 0))  # (C, Cmid)
    b1r = b1.reshape(1, Cmid)
    w2r = w2[:, :, 0, 0]                         # (C, Cmid)
    b2r = b2.reshape(C, 1)

    # Fused working-set estimate: in/out slabs double-buffered + ~3 f32 temps.
    slab = C * HW * itemsize
    fused_workset = 4 * slab + 3 * C * HW * 4
    use_fused = (not force_streaming) and (fused_workset <= _FUSED_BUDGET)

    if use_fused:
        out = pl.pallas_call(
            functools.partial(cca_fused_kernel, hw_total=float(HW)),
            out_shape=jax.ShapeDtypeStruct((N, C, HW), dtype),
            grid=(N,),
            in_specs=[
                pl.BlockSpec((1, C, HW), lambda n: (n, 0, 0)),
                pl.BlockSpec((C, Cmid), lambda n: (0, 0)),
                pl.BlockSpec((1, Cmid), lambda n: (0, 0)),
                pl.BlockSpec((C, Cmid), lambda n: (0, 0)),
                pl.BlockSpec((C, 1), lambda n: (0, 0)),
            ],
            out_specs=pl.BlockSpec((1, C, HW), lambda n: (n, 0, 0)),
            compiler_params=pltpu.CompilerParams(
                dimension_semantics=("parallel",),
                vmem_limit_bytes=_VMEM_LIMIT_BYTES),
        )(x, w1t, b1r, w2r, b2r)
        return out.reshape(N, C, H, W)

    # ---------- streaming fallback (large images) ----------
    if stream_block is None:
        blk = _STREAM_BUDGET // (4 * C * itemsize)        # pass 2 binding: 4 tiles
        blk = max(128, (blk // 128) * 128)
    else:
        blk = stream_block
    assert blk % 128 == 0, "streaming block must be a multiple of 128"
    hw_pad = ((HW + 127) // 128) * 128
    blk = min(blk, hw_pad)
    num_blk = (HW + blk - 1) // blk

    # Pass 1: statistics + conv_du gate -> (N, C, 1) scale in x.dtype.
    # NOTE: on v7x at batch 1 the spatial reduction could additionally be split across
    # the two TensorCores (partial sums combined in the apply pass) for ~2x pass-1.
    scale = pl.pallas_call(
        functools.partial(cca_stats_kernel, hw_total=HW, blk=blk),
        out_shape=jax.ShapeDtypeStruct((N, C, 1), dtype),
        grid=(N, num_blk),
        in_specs=[
            pl.BlockSpec((1, C, blk), lambda n, j: (n, 0, j)),
            pl.BlockSpec((C, Cmid), lambda n, j: (0, 0)),
            pl.BlockSpec((1, Cmid), lambda n, j: (0, 0)),
            pl.BlockSpec((C, Cmid), lambda n, j: (0, 0)),
            pl.BlockSpec((C, 1), lambda n, j: (0, 0)),
        ],
        out_specs=pl.BlockSpec((1, C, 1), lambda n, j: (n, 0, 0)),
        scratch_shapes=[pltpu.VMEM((C, 128), jnp.float32),
                        pltpu.VMEM((C, 128), jnp.float32)],
        compiler_params=pltpu.CompilerParams(
            dimension_semantics=("parallel", "arbitrary"),
            vmem_limit_bytes=_VMEM_LIMIT_BYTES),
    )(x, w1t, b1r, w2r, b2r)

    # Pass 2: lane-dense channel-wise rescale of x (fully parallel grid).
    out = pl.pallas_call(
        cca_apply_kernel,
        out_shape=jax.ShapeDtypeStruct((N, C, HW), dtype),
        grid=(N, num_blk),
        in_specs=[
            pl.BlockSpec((1, C, blk), lambda n, j: (n, 0, j)),
            pl.BlockSpec((1, C, 1), lambda n, j: (n, 0, 0)),
        ],
        out_specs=pl.BlockSpec((1, C, blk), lambda n, j: (n, 0, j)),
        compiler_params=pltpu.CompilerParams(
            dimension_semantics=("parallel", "parallel"),
            vmem_limit_bytes=_VMEM_LIMIT_BYTES),
    )(x, scale)

    return out.reshape(N, C, H, W)


def cca_layer_reference(x, w1, b1, w2, b2):
    """Pure-JAX reference matching the PyTorch CCALayer.forward."""
    mean = jnp.mean(x, axis=(2, 3), keepdims=True)
    var = jnp.mean((x - mean) ** 2, axis=(2, 3), keepdims=True)
    y = jnp.sqrt(var) + mean                                     # stdv + avg_pool
    z1 = jax.lax.conv_general_dilated(
        y, w1, window_strides=(1, 1), padding='VALID',
        dimension_numbers=('NCHW', 'OIHW', 'NCHW')) + b1.reshape(1, -1, 1, 1)
    z1 = jnp.maximum(z1, 0.0)
    z2 = jax.lax.conv_general_dilated(
        z1, w2, window_strides=(1, 1), padding='VALID',
        dimension_numbers=('NCHW', 'OIHW', 'NCHW')) + b2.reshape(1, -1, 1, 1)
    gate = jax.nn.sigmoid(z2)
    return x * gate


if __name__ == "__main__":
    key = jax.random.PRNGKey(0)
    reduction = 16

    # --- Test 1: fused single-pass path (slab fits the VMEM budget) ---
    N, C, H, W = 2, 32, 16, 16
    Cmid = C // reduction
    k_x, k_w1, k_b1, k_w2, k_b2, key = jax.random.split(key, 6)
    x = jax.random.normal(k_x, (N, C, H, W), dtype=jnp.float32)
    w1 = 0.1 * jax.random.normal(k_w1, (Cmid, C, 1, 1), dtype=jnp.float32)
    b1 = 0.1 * jax.random.normal(k_b1, (Cmid,), dtype=jnp.float32)
    w2 = 0.1 * jax.random.normal(k_w2, (C, Cmid, 1, 1), dtype=jnp.float32)
    b2 = 0.1 * jax.random.normal(k_b2, (C,), dtype=jnp.float32)

    out = cca_layer_pallas(x, w1, b1, w2, b2)
    jax.block_until_ready(out)
    ref = cca_layer_reference(x, w1, b1, w2, b2)
    assert out.shape == (N, C, H, W)
    assert jnp.allclose(out, ref, atol=2e-5, rtol=2e-5), "fused path mismatch vs reference"

    # --- Test 2: streaming two-pass path, non-divisible HW -> ragged masked tile ---
    N2, C2, H2, W2 = 1, 64, 24, 20            # HW = 480, blk = 256 -> last tile ragged
    Cmid2 = C2 // reduction
    k_x2, k_w12, k_b12, k_w22, k_b22, key = jax.random.split(key, 6)
    x2 = jax.random.normal(k_x2, (N2, C2, H2, W2), dtype=jnp.float32)
    w12 = 0.1 * jax.random.normal(k_w12, (Cmid2, C2, 1, 1), dtype=jnp.float32)
    b12 = 0.1 * jax.random.normal(k_b12, (Cmid2,), dtype=jnp.float32)
    w22 = 0.1 * jax.random.normal(k_w22, (C2, Cmid2, 1, 1), dtype=jnp.float32)
    b22 = 0.1 * jax.random.normal(k_b22, (C2,), dtype=jnp.float32)

    out2 = cca_layer_pallas(x2, w12, b12, w22, b22,
                            force_streaming=True, stream_block=256)
    jax.block_until_ready(out2)
    ref2 = cca_layer_reference(x2, w12, b12, w22, b22)
    assert out2.shape == (N2, C2, H2, W2)
    assert jnp.allclose(out2, ref2, atol=2e-5, rtol=2e-5), "streaming path mismatch vs reference"

    print("KERNEL_OK")
</pallas_src>

<mosaic_0001>
module attributes {stable_mosaic.version = 11 : i64} {
  func.func @cca_fused_kernel(%arg0: i32, %arg1: memref<1x32x256xf32, #tpu.memory_space<vmem>>, %arg2: memref<32x2xf32, #tpu.memory_space<vmem>>, %arg3: memref<1x2xf32, #tpu.memory_space<vmem>>, %arg4: memref<32x2xf32, #tpu.memory_space<vmem>>, %arg5: memref<32x1xf32, #tpu.memory_space<vmem>>, %arg6: memref<1x32x256xf32, #tpu.memory_space<vmem>>) attributes {dimension_semantics = [#tpu.dimension_semantics<parallel>], iteration_bounds = array<i64: 2>, scalar_prefetch = 0 : i64, scratch_operands = 0 : i64, tpu.core_type = #tpu.core_type<tc>, window_params = [{transform_indices = @transform_0, window_bounds = array<i64: 1, 32, 256>}, {pipeline_mode = #tpu.pipeline_mode<synchronous>, transform_indices = @transform_1, window_bounds = array<i64: 32, 2>}, {pipeline_mode = #tpu.pipeline_mode<synchronous>, transform_indices = @transform_2, window_bounds = array<i64: 1, 2>}, {pipeline_mode = #tpu.pipeline_mode<synchronous>, transform_indices = @transform_3, window_bounds = array<i64: 32, 2>}, {pipeline_mode = #tpu.pipeline_mode<synchronous>, transform_indices = @transform_4, window_bounds = array<i64: 32, 1>}, {transform_indices = @transform_5, window_bounds = array<i64: 1, 32, 256>}]} {
    %c0 = arith.constant 0 : index
    %c0_0 = arith.constant 0 : index
    %c0_1 = arith.constant 0 : index
    %0 = vector.load %arg1[%c0, %c0_0, %c0_1] : memref<1x32x256xf32, #tpu.memory_space<vmem>>, vector<1x32x256xf32>
    %1 = vector.shape_cast %0 : vector<1x32x256xf32> to vector<32x256xf32>
    %cst = arith.constant dense<0.000000e+00> : vector<32xf32>
    %2 = vector.multi_reduction <add>, %1, %cst [1] : vector<32x256xf32> to vector<32xf32>
    %3 = vector.shape_cast %2 : vector<32xf32> to vector<32x1xf32>
    %cst_2 = arith.constant 3.906250e-03 : f32
    %4 = vector.broadcast %cst_2 : f32 to vector<32x1xf32>
    %5 = arith.mulf %3, %4 : vector<32x1xf32>
    %6 = vector.broadcast %5 : vector<32x1xf32> to vector<32x256xf32>
    %7 = arith.subf %1, %6 : vector<32x256xf32>
    %8 = arith.mulf %7, %7 : vector<32x256xf32>
    %cst_3 = arith.constant dense<0.000000e+00> : vector<32xf32>
    %9 = vector.multi_reduction <add>, %8, %cst_3 [1] : vector<32x256xf32> to vector<32xf32>
    %10 = vector.shape_cast %9 : vector<32xf32> to vector<32x1xf32>
    %cst_4 = arith.constant 3.906250e-03 : f32
    %11 = vector.broadcast %cst_4 : f32 to vector<32x1xf32>
    %12 = arith.mulf %10, %11 : vector<32x1xf32>
    %13 = math.sqrt %12 : vector<32x1xf32>
    %14 = arith.addf %13, %5 : vector<32x1xf32>
    %c0_5 = arith.constant 0 : index
    %c0_6 = arith.constant 0 : index
    %15 = vector.load %arg2[%c0_5, %c0_6] : memref<32x2xf32, #tpu.memory_space<vmem>>, vector<32x2xf32>
    %16 = vector.broadcast %14 : vector<32x1xf32> to vector<32x2xf32>
    %17 = arith.mulf %15, %16 : vector<32x2xf32>
    %cst_7 = arith.constant dense<0.000000e+00> : vector<2xf32>
    %18 = vector.multi_reduction <add>, %17, %cst_7 [0] : vector<32x2xf32> to vector<2xf32>
    %19 = vector.shape_cast %18 : vector<2xf32> to vector<1x2xf32>
    %c0_8 = arith.constant 0 : index
    %c0_9 = arith.constant 0 : index
    %20 = vector.load %arg3[%c0_8, %c0_9] : memref<1x2xf32, #tpu.memory_space<vmem>>, vector<1x2xf32>
    %21 = arith.addf %19, %20 : vector<1x2xf32>
    %cst_10 = arith.constant 0.000000e+00 : f32
    %22 = vector.broadcast %cst_10 : f32 to vector<1x2xf32>
    %23 = arith.maximumf %21, %22 : vector<1x2xf32>
    %c0_11 = arith.constant 0 : index
    %c0_12 = arith.constant 0 : index
    %24 = vector.load %arg4[%c0_11, %c0_12] : memref<32x2xf32, #tpu.memory_space<vmem>>, vector<32x2xf32>
    %25 = vector.broadcast %23 : vector<1x2xf32> to vector<32x2xf32>
    %26 = arith.mulf %24, %25 : vector<32x2xf32>
    %cst_13 = arith.constant dense<0.000000e+00> : vector<32xf32>
    %27 = vector.multi_reduction <add>, %26, %cst_13 [1] : vector<32x2xf32> to vector<32xf32>
    %28 = vector.shape_cast %27 : vector<32xf32> to vector<32x1xf32>
    %c0_14 = arith.constant 0 : index
    %c0_15 = arith.constant 0 : index
    %29 = vector.load %arg5[%c0_14, %c0_15] : memref<32x1xf32, #tpu.memory_space<vmem>>, vector<32x1xf32>
    %30 = arith.addf %28, %29 : vector<32x1xf32>
    %cst_16 = arith.constant 0.000000e+00 : f32
    %31 = vector.broadcast %cst_16 : f32 to vector<32x1xf32>
    %32 = arith.subf %31, %30 : vector<32x1xf32>
    %33 = math.exp %32 : vector<32x1xf32>
    %cst_17 = arith.constant 1.000000e+00 : f32
    %34 = vector.broadcast %cst_17 : f32 to vector<32x1xf32>
    %35 = arith.addf %34, %33 : vector<32x1xf32>
    %cst_18 = arith.constant 1.000000e+00 : f32
    %36 = vector.broadcast %cst_18 : f32 to vector<32x1xf32>
    %37 = arith.divf %36, %35 : vector<32x1xf32>
    %c0_19 = arith.constant 0 : index
    %c0_20 = arith.constant 0 : index
    %c0_21 = arith.constant 0 : index
    %38 = vector.load %arg1[%c0_19, %c0_20, %c0_21] : memref<1x32x256xf32, #tpu.memory_space<vmem>>, vector<1x32x256xf32>
    %39 = vector.shape_cast %38 : vector<1x32x256xf32> to vector<32x256xf32>
    %40 = vector.broadcast %37 : vector<32x1xf32> to vector<32x256xf32>
    %41 = arith.mulf %39, %40 : vector<32x256xf32>
    %c0_22 = arith.constant 0 : index
    %c0_23 = arith.constant 0 : index
    %c0_24 = arith.constant 0 : index
    %42 = vector.load %arg6[%c0_22, %c0_23, %c0_24] : memref<1x32x256xf32, #tpu.memory_space<vmem>>, vector<1x32x256xf32>
    %43 = vector.shape_cast %42 : vector<1x32x256xf32> to vector<32x256xf32>
    %44 = vector.shape_cast %41 : vector<32x256xf32> to vector<1x32x256xf32>
    tpu.vector_store %arg6[%c0_22, %c0_23, %c0_24], %44 {strides = array<i32>} : memref<1x32x256xf32, #tpu.memory_space<vmem>>, vector<1x32x256xf32>,
    return
  }
  func.func @transform_0(%arg0: i32) -> (i32, i32, i32) {
    %c0_i32 = arith.constant 0 : i32
    %c0_i32_0 = arith.constant 0 : i32
    %c0_i32_1 = arith.constant 0 : i32
    return %arg0, %c0_i32, %c0_i32_0 : i32, i32, i32
  }
  func.func @transform_1(%arg0: i32) -> (i32, i32) {
    %c0_i32 = arith.constant 0 : i32
    %c0_i32_0 = arith.constant 0 : i32
    %c0_i32_1 = arith.constant 0 : i32
    return %c0_i32, %c0_i32_0 : i32, i32
  }
  func.func @transform_2(%arg0: i32) -> (i32, i32) {
    %c0_i32 = arith.constant 0 : i32
    %c0_i32_0 = arith.constant 0 : i32
    %c0_i32_1 = arith.constant 0 : i32
    return %c0_i32, %c0_i32_0 : i32, i32
  }
  func.func @transform_3(%arg0: i32) -> (i32, i32) {
    %c0_i32 = arith.constant 0 : i32
    %c0_i32_0 = arith.constant 0 : i32
    %c0_i32_1 = arith.constant 0 : i32
    return %c0_i32, %c0_i32_0 : i32, i32
  }
  func.func @transform_4(%arg0: i32) -> (i32, i32) {
    %c0_i32 = arith.constant 0 : i32
    %c0_i32_0 = arith.constant 0 : i32
    %c0_i32_1 = arith.constant 0 : i32
    return %c0_i32, %c0_i32_0 : i32, i32
  }
  func.func @transform_5(%arg0: i32) -> (i32, i32, i32) {
    %c0_i32 = arith.constant 0 : i32
    %c0_i32_0 = arith.constant 0 : i32
    %c0_i32_1 = arith.constant 0 : i32
    return %arg0, %c0_i32, %c0_i32_0 : i32, i32, i32
  }
}

</mosaic_0001>

<bundles_post_ra>
// kernel: tpu_custom_call.1
= control target key start
LH: loop header
LB: loop body
LE: loop exit
PB: predicated region body
PF: predicated region fallthrough
CT: control target
= control target key end

     0   :  { %10 = vsyncpa [#allocation3], 0  ;;  %s1014_s0 = inlined_call_operand.hbm [shape: f32[2,32,256], index: 0, kind: input, shape index: {}]   ;;  %s1015_s1 = inlined_call_operand.vmem [shape: f32[32,2], index: 1, kind: input, shape index: {}]   ;;  %s1016_s2 = inlined_call_operand.vmem [shape: f32[1,2], index: 2, kind: input, shape index: {}]   ;;  %s1017_s3 = inlined_call_operand.vmem [shape: f32[32,2], index: 3, kind: input, shape index: {}]   ;;  %s1018_s4 = inlined_call_operand.vmem [shape: f32[32,1], index: 4, kind: input, shape index: {}]   ;;  %s1019_s5 = inlined_call_operand.hbm [shape: f32[2,32,256], index: 5, kind: output, shape index: {}]  }
   0x1   :  { %12 = vsyncpa [#allocation3 + $0x1], 0 }
   0x2   :  { %13 = vsyncpa [#allocation4], 0 }
   0x3   :  { %15 = vsyncpa [#allocation4 + $0x1], 0  ;;  %s759_s18 = smov 0   ;;  %s761_s19 = smov 0  }
   0x4   :  { %s763_s20 = smov 0   ;;  %s765_s21 = smov 0  }
   0x5 LB: > { %s780_s22 = sadd.s32 4294967295, %s720_s21   ;;  %s535_s23 = sadd.s32 4294967294, %s720_s21   ;;  %s720_s21 = sphi %s765_s21, %s1034_s21   ;;  %s716_s20 = sphi %s763_s20, %s1033_s20   ;;  %s712_s19 = sphi %s761_s19, %s1032_s19   ;;  %s708_s18 = sphi %s759_s18, %s1031_s18  }
   0x6   : > { %s784_s24 = sadd.s32 1, %s720_s21   ;;  %s28_s25 = sadd.s32 1, %s716_s20 }
   0x7   : > { %s25_s26 = ssub.s32 %s720_s21, %s784_s24  ;;  %p35_p0 = scmp.ne.s32.totalorder %s716_s20, %s712_s19 }
   0x8   : > { %p26_p1 = scmp.eq.s32.totalorder %s25_s26, 0  ;;  %p36_p2 = scmp.eq.s32.totalorder %s720_s21, 0 }
   0x9   : > { %p41_p3 = scmp.ne.s32.totalorder %s712_s19, %s708_s18  ;;  %p42_p4 = scmp.eq.s32.totalorder %s780_s22, 0 }
   0xa   : > { %s796_s27 = scalar_select %p26_p1, %s716_s20, %s28_s25  }
   0xb   : > { %p798_p5 = por %p36_p2, %p35_p0  ;;  %p802_p6 = por %p42_p4, %p41_p3 }
   0xc   : > { %p149_p7 = scmp.eq.s32.totalorder %s780_s22, 1  ;;  %p155_p8 = scmp.eq.s32.totalorder %s535_s23, 1 }
   0xd   : > { %s1023_s29 = scalar_select %p802_p6, 1, 0 }
   0xe   : > { %p563_p10 = scmp.lt.s32.totalorder %s720_s21, 2  ;;  %p809_p11 = por %p149_p7, %p35_p0 }
   0xf   : > { %p813_p12 = por %p155_p8, %p41_p3  ;;  %s187_s7 = sand.u32 1, %s716_s20  }
  0x10   : > { %s1024_s30 = scalar_select %p809_p11, 1, 0 }
  0x11   : > { %s1025_s6 = scalar_select %p813_p12, 1, 0 }
  0x12   : > { %s549_s8 = sshll.u32 %s720_s21, 10  ;;  %s538_s9 = sshll.u32 %s187_s7, 6 }
  0x13   : > { %s822_s12 = scalar_lea.hbm %s1014_s0, %s549_s8  ;;  %s191_s13 = scalar_lea.vmem [#allocation2], %s538_s9 }
  0x14   : > { %s198_s14 = sshll.u32 %s191_s13, 4  ;;  %p826_p13 = pnand %p563_p10, %p798_p5  ;;  %s830_s14 = int_to_ptr.vmem [resolvable:$true] %s198_s14 }
  0x15   : > { %s832_s16 = scalar_lea.sflag [#allocation3], %s187_s7  ;;  %s628_s17 = scalar_lea.hbm %s822_s12, 1024 }
  0x16   : > { %p629_p0 = scmp.ne.s32.totalorder %s822_s12, %s628_s17  ;;  %p630_p1 = pneg %p826_p13 }
  0x17   : > { %s633_s26 = scalar_lea.hbm %s1014_s0, 2048  ;;  %p634_p4 = scmp.lt.s32.totalorder %s822_s12, %s1014_s0 }
  0x18   : > { %p631_p2 = pnand %p630_p1, %p629_p0  ;;  %p635_p5 = scmp.lt.s32.totalorder %s633_s26, %s628_s17 }
  0x1a   : > { %p632_p3 = pneg %p631_p2  ;;  %p636_p7 = por %p635_p5, %p634_p4 }
  0x1c   : > { %p637_p8 = pnand %p636_p7, %p632_p3 }
  0x1e   : > { %640 = shalt.err (!%p637_p8)
}
  0x1f   : > { %s641_s7 = scalar_lea.vmem %s830_s14, 1024  ;;  %s722_s9 = smov [#allocation2]  }
  0x20   : > { %p642_p10 = scmp.ne.s32.totalorder %s830_s14, %s641_s7  ;;  %s646_s10 = sshll.u32 %s722_s9, 4  ;;  %s647_s10 = int_to_ptr.vmem [resolvable:$false] %s646_s10 }
  0x21   : > { %s648_s11 = scalar_lea.vmem %s647_s10, 2048  ;;  %p649_p2 = scmp.lt.s32.totalorder %s830_s14, %s647_s10 }
  0x22   : > { %p644_p9 = pnand %p642_p10, %p630_p1  ;;  %p650_p12 = scmp.lt.s32.totalorder %s648_s11, %s641_s7 }
  0x24   : > { %p645_p0 = pneg %p644_p9  ;;  %p651_p11 = por %p650_p12, %p649_p2 }
  0x26   : > { %p652_p6 = pnand %p651_p11, %p645_p0 }
  0x28   : > { %655 = shalt.err (!%p652_p6)
}
  0x29   : > { %s723_s13 = smov 256   ;;  %s724_s17 = smov 16  }
  0x2a   : > { %558 = dma.hbm_to_vmem [thread:$0]  (!%p826_p13), %s822_s12, 1024, %s830_s14, %s832_s16, %s723_s13, %s723_s13, %s724_s17  }
  0x2b   : > { %p541_p9 = scmp.ge.s32.totalorder %s720_s21, 1  ;;  %p206_p1 = scmp.lt.s32.totalorder %s720_s21, 3 }
  0x2d   : > { %p207_p3 = pnand %p541_p9, %p206_p1 }
  0x2e   : > { %s856_s23 = sand.u32 (!%p207_p3), 1, %s712_s19   ;;  %p1027_p6 = scmp.ne.s32.totalorder (!%p207_p3), %s1023_s29, 0 }
  0x2f   : > { %210 = sbr.rel (%p207_p3) target bundleno = 719 (0x2cf), region = 40  ;;  %s542_s25 = sshll.u32 (!%p207_p3), %s856_s23, 6 }
  0x30   : > { %s213_s26 = scalar_lea.sflag (!%p207_p3), [#allocation3], %s856_s23  ;;  %s216_s28 = scalar_lea.vmem (!%p207_p3), [#allocation2], %s542_s25 }
  0x34   : > { %699 = dma.done.wait (%p1027_p6), %s213_s26, 1024  }
  0x35   : > { %701 = vsyncadd (%p1027_p6), %s213_s26, 4294966272  ;;  %v866_v0 = vld [vmem:[%s216_s28] sm:$0xff]  ;;  %v868_v1 = vld [vmem:[%s216_s28 + $0x8] sm:$0xff]  ;;  %vm339_vm7 = vcmask 15360   ;;  %s242_s26 = scalar_lea.vmem [#allocation5], %s542_s25  ;;  %s550_s29 = sshll.u32 %s780_s22, 10 }
  0x36   : > { %v870_v2 = vld [vmem:[%s216_s28 + $0x20] sm:$0xff]  ;;  %v251_v3 = vadd.f32 %v868_v1, %v866_v0  ;;  %v874_v4 = vld [vmem:[%s216_s28 + $0x28] sm:$0xff]  ;;  %v876_v5 = vld [vmem:[%s216_s28 + $0x10] sm:$0xff]  ;;  %s969_s14 = scalar_lea.hbm %s1019_s5, %s550_s29  ;;  %s449_s22 = scalar_lea.sflag [#allocation4], %s856_s23 }
  0x37   : > { %v878_v6 = vld [vmem:[%s216_s28 + $0x18] sm:$0xff]  ;;  %v257_v7 = vadd.f32 %v874_v4, %v870_v2  ;;  %v882_v8 = vld [vmem:[%s216_s28 + $0x30] sm:$0xff]  ;;  %v331_v57 = vld [vmem:[%s1015_s1] sm:$0xff]  ;;  %p1028_p12 = scmp.ne.s32.totalorder %s1024_s30, 0  ;;  %s726_s16 = smov [#allocation5]  }
  0x38   : > { %v884_v9 = vld [vmem:[%s216_s28 + $0x38] sm:$0xff]  ;;  %252 = vadd.xlane.f32.xlu0 %v251_v3  ;;  %v254_v10 = vadd.f32 %v878_v6, %v876_v5  ;;  %v332_v63 = vld [vmem:[%s1015_s1 + $0x8] sm:$0xff]  ;;  %s462_s28 = sshll.u32 %s242_s26, 4  ;;  %s660_s8 = sshll.u32 %s726_s16, 4  ;;  %s964_s28 = int_to_ptr.vmem [resolvable:$true] %s462_s28  ;;  %s661_s8 = int_to_ptr.vmem [resolvable:$false] %s660_s8 }
  0x39   : > { %258 = vadd.xlane.f32.xlu1 %v257_v7  ;;  %v260_v11 = vadd.f32 %v884_v9, %v882_v8  ;;  %s656_s15 = scalar_lea.vmem %s964_s28, 1024  ;;  %s662_s7 = scalar_lea.vmem %s661_s8, 2048 }
  0x3a   : > { %p657_p11 = scmp.ne.s32.totalorder %s964_s28, %s656_s15  ;;  %p663_p5 = scmp.lt.s32.totalorder %s964_s28, %s661_s8 }
  0x3b   : > { %p664_p7 = scmp.lt.s32.totalorder %s662_s7, %s656_s15 }
  0x3c   : > { %255 = vadd.xlane.f32.xlu0 %v254_v10  ;;  %p658_p13 = pnand %p657_p11, %p1028_p12 }
  0x3d   : > { %261 = vadd.xlane.f32.xlu1 %v260_v11  ;;  %p665_p8 = por %p664_p7, %p663_p5 }
  0x3e   : > { %p659_p4 = pneg %p658_p13 }
  0x40   : > { %p666_p10 = pnand %p665_p8, %p659_p4 }
  0xc1   : > { %v253_v12 = vpop.xlane.xlu0 %252 }
  0xc2   : > { %v263_v13 = vmul.f32 0.00390625, %v253_v12  ;;  %v259_v14 = vpop.xlane.xlu1 %258  ;;  %v333_v12 = vld [vmem:[%s1015_s1 + $0x10] sm:$0xff] }
  0xc3   : > { %v890_v15 = vmul.f32 0.00390625, %v259_v14 }
  0xc4   : > { %v267_v16 = vsub.f32 %v866_v0, %v263_v13  ;;  %v268_v17 = vsub.f32 %v868_v1, %v263_v13 }
  0xc5   : > { %v256_v18 = vpop.xlane.xlu0 %255  ;;  %v271_v19 = vsub.f32 %v870_v2, %v890_v15  ;;  %v272_v20 = vsub.f32 %v874_v4, %v890_v15 }
  0xc6   : > { %v264_v21 = vmul.f32 0.00390625, %v256_v18  ;;  %v262_v22 = vpop.xlane.xlu1 %261  ;;  %v275_v23 = vmul.f32 %v267_v16, %v267_v16  ;;  %v276_v24 = vmul.f32 %v268_v17, %v268_v17 }
  0xc7   : > { %v898_v25 = vmul.f32 0.00390625, %v262_v22  ;;  %v279_v26 = vmul.f32 %v271_v19, %v271_v19  ;;  %v280_v27 = vmul.f32 %v272_v20, %v272_v20  ;;  %v334_v22 = vld [vmem:[%s1015_s1 + $0x18] sm:$0xff] }
  0xc8   : > { %v283_v28 = vadd.f32 %v276_v24, %v275_v23  ;;  %v269_v29 = vsub.f32 %v876_v5, %v264_v21  ;;  %v270_v30 = vsub.f32 %v878_v6, %v264_v21 }
  0xc9   : > { %v273_v31 = vsub.f32 %v882_v8, %v898_v25  ;;  %v274_v32 = vsub.f32 %v884_v9, %v898_v25  ;;  %v289_v33 = vadd.f32 %v280_v27, %v279_v26 }
  0xca   : > { %284 = vadd.xlane.f32.xlu0 %v283_v28  ;;  %v277_v34 = vmul.f32 %v269_v29, %v269_v29  ;;  %v278_v35 = vmul.f32 %v270_v30, %v270_v30 }
  0xcb   : > { %v281_v36 = vmul.f32 %v273_v31, %v273_v31  ;;  %v282_v37 = vmul.f32 %v274_v32, %v274_v32 }
  0xcc   : > { %v286_v38 = vadd.f32 %v278_v35, %v277_v34  ;;  %v360_v35 = vlaneseq }
  0xcd   : > { %v292_v39 = vadd.f32 %v282_v37, %v281_v36 }
  0xce   : > { %290 = vadd.xlane.f32.xlu0 %v289_v33  ;;  %287 = vadd.xlane.f32.xlu1 %v286_v38  ;;  %v361_v38 = vshrl.u32 %v360_v35, 7 }
  0xd2   : > { %293 = vadd.xlane.f32.xlu1 %v292_v39 }
 0x153   : > { %v285_v40 = vpop.xlane.xlu0 %284 }
 0x154   : > { %v295_v41 = vmul.f32 0.00390625, %v285_v40 }
 0x156   : > { %604 = vrsqrt.f32 %v295_v41  ;;  %vm301_vm0 = vcmp.eq.f32.partialorder %v295_v41, inf  ;;  %v304_v50 = vand.u32 2147483648, %v295_v41  ;;  %vm303_vm1 = vcmp.eq.f32.partialorder %v295_v41, 0.0 }
 0x157   : > { %v288_v42 = vpop.xlane.xlu1 %287  ;;  %v291_v43 = vpop.xlane.xlu0 %290 }
 0x158   : > { %v296_v44 = vmul.f32 0.00390625, %v288_v42  ;;  %v297_v45 = vmul.f32 0.00390625, %v291_v43  ;;  %v357_v43 = vld [vmem:[%s1017_s3 + $0x8] sm:$0xff] }
 0x15a   : > { %606 = vrsqrt.f32 %v296_v44  ;;  %vm308_vm2 = vcmp.eq.f32.partialorder %v296_v44, inf  ;;  %v311_v58 = vand.u32 2147483648, %v296_v44  ;;  %vm310_vm3 = vcmp.eq.f32.partialorder %v296_v44, 0.0 }
 0x15b   : > { %608 = vrsqrt.f32 %v297_v45  ;;  %v294_v46 = vpop.xlane.xlu1 %293  ;;  %vm315_vm4 = vcmp.eq.f32.partialorder %v297_v45, inf  ;;  %v318_v61 = vand.u32 2147483648, %v297_v45  ;;  %vm317_vm5 = vcmp.eq.f32.partialorder %v297_v45, 0.0 }
 0x15c   : > { %v298_v47 = vmul.f32 0.00390625, %v294_v46  ;;  %v359_v46 = vld [vmem:[%s1017_s3 + $0x18] sm:$0xff] }
 0x15e   : > { %610 = vrsqrt.f32 %v298_v47  ;;  %vm322_vm6 = vcmp.eq.f32.partialorder %v298_v47, inf  ;;  %v325_v17 = vand.u32 2147483648, %v298_v47  ;;  %vm324_vm8 = vcmp.eq.f32.partialorder %v298_v47, 0.0 }
 0x163   : > { %v605_v48 = vpop.eup %604 }
 0x164   : > { %v300_v49 = vmul.f32 %v605_v48, %v295_v41 }
 0x166   : > { %v302_v51 = vsel %vm301_vm0, %v295_v41, %v300_v49  ;;  %v362_v41 = vsub.s32 0, %v361_v38 }
 0x167   : > { %v607_v52 = vpop.eup %606  ;;  %v305_v53 = vsel %vm303_vm1, %v304_v50, %v302_v51 }
 0x168   : > { %v609_v54 = vpop.eup %608  ;;  %v327_v55 = vadd.f32 %v305_v53, %v263_v13  ;;  %v307_v56 = vmul.f32 %v607_v52, %v296_v44 }
 0x169   : > { %v314_v59 = vmul.f32 %v609_v54, %v297_v45 }
 0x16a   : > { %v309_v60 = vsel %vm308_vm2, %v296_v44, %v307_v56  ;;  %v335_v10 = vmul.f32 %v331_v57, %v327_v55  ;;  %v356_v44 = vld [vmem:[%s1017_s3] sm:$0xff]  ;;  %v725_v56 = vmov 0   ;;  %v381_v57 = vld [vmem:[%s1018_s4 + $0x8] sm:$0xff] }
 0x16b   : > { %v611_v62 = vpop.eup %610  ;;  %v312_v3 = vsel %vm310_vm3, %v311_v58, %v309_v60  ;;  %v316_v7 = vsel %vm315_vm4, %v297_v45, %v314_v59  ;;  %603 = vset.pattern.permute.xlu1 %v725_v56  ;;  %602 = vset.pattern.permute.xlu0 %v725_v56  ;;  %v380_v58 = vld [vmem:[%s1018_s4] sm:$0xff] }
 0x16c   : > { %v328_v11 = vadd.f32 %v312_v3, %v264_v21  ;;  %v319_v13 = vsel %vm317_vm5, %v318_v61, %v316_v7  ;;  %v321_v14 = vmul.f32 %v611_v62, %v298_v47  ;;  %v340_v24 = vsel %vm339_vm7, %v335_v10, 0.0  ;;  %v382_v3 = vld [vmem:[%s1018_s4 + $0x10] sm:$0xff] }
 0x16d   : > { %v329_v16 = vadd.f32 %v319_v13, %v890_v15 }
 0x16e   : > { %v336_v18 = vmul.f32 %v332_v63, %v328_v11  ;;  %v323_v19 = vsel %vm322_vm6, %v298_v47, %v321_v14  ;;  %v358_v47 = vld [vmem:[%s1017_s3 + $0x10] sm:$0xff]  ;;  %v383_v63 = vld [vmem:[%s1018_s4 + $0x18] sm:$0xff] }
 0x16f   : > { %v337_v20 = vmul.f32 %v333_v12, %v329_v16  ;;  %v326_v21 = vsel %vm324_vm8, %v325_v17, %v323_v19 }
 0x170   : > { %v330_v23 = vadd.f32 %v326_v21, %v898_v25  ;;  %v341_v26 = vsel %vm339_vm7, %v336_v18, 0.0  ;;  %v353_v25 = vld [vmem:[%s1016_s2] sm:$0x1] }
 0x171   : > { %v342_v27 = vadd.f32 %v341_v26, %v340_v24  ;;  %v343_v28 = vsel %vm339_vm7, %v337_v20, 0.0 }
 0x172   : > { %v338_v15 = vmul.f32 %v334_v22, %v330_v23 }
 0x173   : > { %v344_v29 = vadd.f32 %v343_v28, %v342_v27 }
 0x174   : > { %v345_v30 = vsel %vm339_vm7, %v338_v15, 0.0 }
 0x175   : > { %v346_v31 = vadd.f32 %v345_v30, %v344_v29 }
 0x177   : > { %v347_v32 = vrot.slane %v346_v31, 4 }
 0x179   : > { %v348_v33 = vadd.f32 %v347_v32, %v346_v31 }
 0x17b   : > { %v349_v34 = vrot.slane %v348_v33, 2 }
 0x17d   : > { %v350_v36 = vadd.f32 %v349_v34, %v348_v33 }
 0x17f   : > { %v351_v37 = vrot.slane %v350_v36, 1 }
 0x181   : > { %v352_v39 = vadd.f32 %v351_v37, %v350_v36 }
 0x183   : > { %v354_v40 = vadd.f32 %v353_v25, %v352_v39 }
 0x185   : > { %v355_v42 = vmax.f32 %v354_v40, 0.0 }
 0x187   : > { %v363_v45 = vrot.slane %v355_v42, %v362_v41 }
 0x189   : > { %v365_v48 = vmul.f32 %v363_v45, %v357_v43  ;;  %v364_v49 = vmul.f32 %v363_v45, %v356_v44  ;;  %v367_v52 = vmul.f32 %v363_v45, %v359_v46  ;;  %v366_v53 = vmul.f32 %v363_v45, %v358_v47 }
 0x18b   : > { %v371_v50 = vsel %vm339_vm7, %v365_v48, 0.0  ;;  %v368_v51 = vsel %vm339_vm7, %v364_v49, 0.0  ;;  %v377_v54 = vsel %vm339_vm7, %v367_v52, 0.0  ;;  %v374_v55 = vsel %vm339_vm7, %v366_v53, 0.0 }
 0x18c   : > { %372 = vadd.xlane.f32.xlu1 %v371_v50  ;;  %369 = vadd.xlane.f32.xlu0 %v368_v51 }
 0x190   : > { %378 = vadd.xlane.f32.xlu1 %v377_v54  ;;  %375 = vadd.xlane.f32.xlu0 %v374_v55 }
 0x215   : > { %v373_v59 = vpop.xlane.xlu1 %372  ;;  %v370_v60 = vpop.xlane.xlu0 %369 }
 0x216   : > { %v385_v61 = vadd.f32 %v381_v57, %v373_v59  ;;  %v384_v62 = vadd.f32 %v380_v58, %v370_v60 }
 0x218   : > { %v389_v7 = vsub.f32 0.0, %v385_v61  ;;  %v388_v10 = vsub.f32 0.0, %v384_v62 }
 0x219   : > { %v379_v11 = vpop.xlane.xlu1 %378  ;;  %v376_v12 = vpop.xlane.xlu0 %375 }
 0x21a   : > { %v394_v13 = vmul.f32 1.442695, %v389_v7  ;;  %v392_v14 = vmul.f32 1.442695, %v388_v10  ;;  %v387_v16 = vadd.f32 %v383_v63, %v379_v11  ;;  %v386_v17 = vadd.f32 %v382_v3, %v376_v12 }
 0x21c   : > { %612 = vpow2.f32 %v394_v13  ;;  %v391_v18 = vsub.f32 0.0, %v387_v16  ;;  %v390_v19 = vsub.f32 0.0, %v386_v17 }
 0x21d   : > { %614 = vpow2.f32 %v392_v14 }
 0x21e   : > { %v398_v20 = vmul.f32 1.442695, %v391_v18  ;;  %v396_v22 = vmul.f32 1.442695, %v390_v19 }
 0x220   : > { %616 = vpow2.f32 %v398_v20 }
 0x221   : > { %618 = vpow2.f32 %v396_v22 }
 0x229   : > { %v613_v21 = vpop.eup %612 }
 0x22a   : > { %v615_v23 = vpop.eup %614  ;;  %v401_v24 = vadd.f32 1.0, %v613_v21 }
 0x22b   : > { %v400_v26 = vadd.f32 1.0, %v615_v23 }
 0x22c   : > { %620 = vrcp.f32 %v401_v24 }
 0x22d   : > { %v617_v27 = vpop.eup %616  ;;  %622 = vrcp.f32 %v400_v26 }
 0x22e   : > { %v619_v15 = vpop.eup %618  ;;  %v403_v29 = vadd.f32 1.0, %v617_v27 }
 0x22f   : > { %v402_v28 = vadd.f32 1.0, %v619_v15 }
 0x231   : > { %624 = vrcp.f32 %v402_v28 }
 0x232   : > { %626 = vrcp.f32 %v403_v29 }
 0x239   : > { %v621_v30 = vpop.eup %620 }
 0x23a   : > { %v623_v31 = vpop.eup %622  ;;  %419 = vperm.xlu1 %603, %v621_v30  }
 0x23b   : > { %414 = vperm.xlu0 %602, %v623_v31  }
 0x23e   : > { %v625_v32 = vpop.eup %624 }
 0x23f   : > { %424 = vperm.xlu1 %603, %v625_v32   ;;  %v627_v33 = vpop.eup %626 }
 0x243   : > { %429 = vperm.xlu1 %603, %v627_v33  }
 0x2b5   : > { %v420_v34 = vpop.permute.xlu1 %419 }
 0x2b6   : > { %v434_v35 = vmul.f32 %v420_v34, %v876_v5  ;;  %v435_v36 = vmul.f32 %v420_v34, %v878_v6  ;;  %v415_v37 = vpop.permute.xlu0 %414 }
 0x2b7   : > { %v432_v38 = vmul.f32 %v415_v37, %v866_v0  ;;  %v433_v25 = vmul.f32 %v415_v37, %v868_v1 }
 0x2b8   : > { %442 = vst [vmem:[%s242_s26 + $0x10] sm:$0xff] %v434_v35  ;;  %443 = vst [vmem:[%s242_s26 + $0x18] sm:$0xff] %v435_v36 }
 0x2b9   : > { %440 = vst [vmem:[%s242_s26] sm:$0xff] %v432_v38  ;;  %441 = vst [vmem:[%s242_s26 + $0x8] sm:$0xff] %v433_v25 }
 0x2ba   : > { %v425_v39 = vpop.permute.xlu1 %424 }
 0x2bb   : > { %v436_v40 = vmul.f32 %v425_v39, %v870_v2  ;;  %v437_v5 = vmul.f32 %v425_v39, %v874_v4 }
 0x2bd   : > { %444 = vst [vmem:[%s242_s26 + $0x20] sm:$0xff] %v436_v40  ;;  %445 = vst [vmem:[%s242_s26 + $0x28] sm:$0xff] %v437_v5 }
 0x2be   : > { %v430_v0 = vpop.permute.xlu1 %429 }
 0x2bf   : > { %v438_v1 = vmul.f32 %v430_v0, %v882_v8  ;;  %v439_v2 = vmul.f32 %v430_v0, %v884_v9 }
 0x2c1   : > { %446 = vst [vmem:[%s242_s26 + $0x30] sm:$0xff] %v438_v1  ;;  %447 = vst [vmem:[%s242_s26 + $0x38] sm:$0xff] %v439_v2 }
 0x2c2   : > { %669 = shalt.err (!%p666_p10)
}
 0x2c3   : > { %s670_s9 = scalar_lea.hbm %s969_s14, 1024  ;;  %s674_s13 = scalar_lea.hbm %s1019_s5, 2048 }
 0x2c4   : > { %p671_p0 = scmp.ne.s32.totalorder %s969_s14, %s670_s9  ;;  %p675_p1 = scmp.lt.s32.totalorder %s969_s14, %s1019_s5 }
 0x2c5   : > { %p676_p3 = scmp.lt.s32.totalorder %s674_s13, %s670_s9 }
 0x2c6   : > { %p672_p2 = pnand %p671_p0, %p1028_p12 }
 0x2c7   : > { %p677_p6 = por %p676_p3, %p675_p1 }
 0x2c8   : > { %p673_p9 = pneg %p672_p2 }
 0x2ca   : > { %p678_p11 = pnand %p677_p6, %p673_p9 }
 0x2cc   : > { %681 = shalt.err (!%p678_p11)
}
 0x2cd   : > { %s727_s29 = smov 256   ;;  %s728_s25 = smov 16  }
 0x2ce   : > { %553 = dma.vmem_to_hbm [thread:$0]  (%p1028_p12), %s964_s28, 1024, %s969_s14, %s449_s22, %s727_s29, %s727_s29, %s728_s25  }
 0x2cf PF: > { %s477_s12 = sand.u32 1, %s708_s18   ;;  %p1029_p13 = scmp.ne.s32.totalorder %s1025_s6, 0 }
 0x2d0   : > { %p1030_p4 = scmp.ge.s32.totalorder %s720_s21, 2  ;;  %s478_s15 = scalar_lea.sflag [#allocation4], %s477_s12 }
 0x2d2   : > { %p560_p5 = pnand %p1030_p4, %p1029_p13 }
 0x2d4   : > { %p561_p7 = pneg %p560_p5 }
 0x2d6   : > { %703 = dma.done.wait (%p561_p7), %s478_s15, 1024  }
 0x2d7   : > { %705 = vsyncadd (%p561_p7), %s478_s15, 4294966272  ;;  %p18_p8 = scmp.ge.s32.totalorder %s784_s24, 4   ;;  %s1031_s18 = smov %s712_s19 }
 0x2d8   : > { %s1032_s19 = smov %s716_s20  ;;  %s1033_s20 = smov %s796_s27 }
 0x2d9   : > { %s1034_s21 = smov %s784_s24  ;;  %20 = sbr.rel (!%p18_p8) target bundleno = 5 (0x5), region = 85 }
 0x2de   :  { %483 = vsyncpa [#allocation3], 1 }
 0x2df   :  { %485 = vsyncpa [#allocation3 + $0x1], 1 }
 0x2e0   :  { %486 = vsyncpa [#allocation4], 1 }
 0x2e1   :  { %488 = vsyncpa [#allocation4 + $0x1], 1 }

</bundles_post_ra>
